<compile_context>
chip_gen: v7x
topology: tpu7x:2x2x1
jax: 0.10.0
libtpu: 0.0.40
codegen_flags: <defaults>
</compile_context>

<pallas_src>
import functools

import jax
import jax.numpy as jnp
from jax import lax
from jax.experimental import pallas as pl
from jax.experimental.pallas import tpu as pltpu


def _gem_kernel(p_ref, x_ref, pt_ref, o_ref, *, eps, inv_count):
    # p_ref : SMEM (1,) f32 learnable exponent
    # x_ref : VMEM (TC, H*W)          pt_ref: VMEM (H*W, H_out*W_out)
    # o_ref : VMEM (TC, H_out*W_out)
    p = p_ref[0]
    inv_p = 1.0 / p
    x = jnp.maximum(x_ref[...].astype(jnp.float32), eps)   # clamp(min=eps) > 0
    xp = jnp.exp(p * jnp.log(x))                            # x ** p (1 log + 1 exp / elem)
    pooled = jnp.dot(xp, pt_ref[...],
                     preferred_element_type=jnp.float32) * inv_count
    o_ref[...] = jnp.exp(inv_p * jnp.log(pooled)).astype(o_ref.dtype)


def _pool_matrix(length, length_out, k, s, pad):
    """0/1 matrix M of shape (length_out, length): M[i, j] = 1 iff input index j
    falls inside the i-th pooling window (after zero padding)."""
    rows = jnp.arange(length_out)[:, None]
    cols = jnp.arange(length)[None, :]
    start = rows * s - pad
    return ((cols >= start) & (cols < start + k)).astype(jnp.float32)


def _choose_block_nc(nc, hw, howo, vmem_budget_bytes=24 * 1024 * 1024):
    """Planes per grid step: biggest block fitting a gen-safe VMEM budget
    (double-buffered in/out + f32 intermediates + resident pooling matrix),
    capped so large problems yield >= 2 grid steps (v7x has 2 TensorCores) and
    rounded to the 8-sublane tiling whenever it is not the full dimension."""
    per_plane_bytes = 4 * (3 * hw + 3 * howo)   # 2x in (dbl-buf) + xp + 2x out + pooled
    fixed_bytes = 8 * hw * howo                 # pooling matrix (budget double-buffered)
    tc = max(8, (vmem_budget_bytes - fixed_bytes) // per_plane_bytes)
    tc = min(tc, 1024)
    half = -(-nc // 2)                          # ceil(nc / 2): leave work for 2 cores
    half = -(-half // 8) * 8                    # round up to sublane multiple
    tc = min(tc, max(8, half))
    if tc >= nc:
        return nc                               # full dim: no multiple-of-8 constraint
    return max(8, (tc // 8) * 8)


def gem_forward(x, p, *, eps=1e-6, kk=(3, 3), ss=(2, 2), pp=(1, 1)):
    """GeM forward. x: (N, C, H, W), p: (1,) float32 learnable parameter."""
    N, C, H, W = x.shape
    H_out = (H + 2 * pp[0] - kk[0]) // ss[0] + 1
    W_out = (W + 2 * pp[1] - kk[1]) // ss[1] + 1
    NC, HW, HoWo = N * C, H * W, H_out * W_out

    if HW * HoWo * 4 > 8 * 1024 * 1024:
        # TODO(synk): add a separable (A @ X @ B^T) two-matmul kernel for large
        # spatial planes where kron(A, B) no longer fits comfortably in VMEM.
        raise NotImplementedError(
            "spatial plane too large for the fused kron-pool GeM kernel")

    A = _pool_matrix(H, H_out, kk[0], ss[0], pp[0])    # (H_out, H)
    B = _pool_matrix(W, W_out, kk[1], ss[1], pp[1])    # (W_out, W)
    Pt = jnp.kron(A, B).T                              # (H*W, H_out*W_out)
    inv_count = 1.0 / float(kk[0] * kk[1])             # count_include_pad=True

    xf = x.reshape(NC, HW)                             # free (row-major) reshape

    tc = _choose_block_nc(NC, HW, HoWo)
    grid = (pl.cdiv(NC, tc),)

    kernel = functools.partial(_gem_kernel, eps=float(eps), inv_count=inv_count)

    cost = pl.CostEstimate(
        flops=2 * NC * HW * HoWo + 2 * NC * (HW + HoWo),
        transcendentals=2 * NC * (HW + HoWo),
        bytes_accessed=4 * (NC * HW + NC * HoWo + HW * HoWo),
    )

    out = pl.pallas_call(
        kernel,
        out_shape=jax.ShapeDtypeStruct((NC, HoWo), x.dtype),
        grid=grid,
        in_specs=[
            pl.BlockSpec(memory_space=pltpu.MemorySpace.SMEM),   # p (scalar)
            pl.BlockSpec((tc, HW), lambda i: (i, 0)),            # batched planes
            pl.BlockSpec((HW, HoWo), lambda i: (0, 0)),          # pooling matrix (resident)
        ],
        out_specs=pl.BlockSpec((tc, HoWo), lambda i: (i, 0)),
        compiler_params=pltpu.CompilerParams(
            dimension_semantics=("parallel",),
            vmem_limit_bytes=48 * 1024 * 1024,
        ),
        cost_estimate=cost,
    )(p.astype(jnp.float32), xf, Pt)

    return out.reshape(N, C, H_out, W_out)


def _gem_reference(x, p, *, eps=1e-6, kk=(3, 3), ss=(2, 2), pp=(1, 1)):
    """Pure-JAX reference mirroring F.avg_pool2d(count_include_pad=True)."""
    p_val = p[0]
    xp = jnp.power(jnp.clip(x, eps, None), p_val)
    summed = lax.reduce_window(
        xp, 0.0, lax.add,
        window_dimensions=(1, 1, kk[0], kk[1]),
        window_strides=(1, 1, ss[0], ss[1]),
        padding=[(0, 0), (0, 0), (pp[0], pp[0]), (pp[1], pp[1])],
    )
    pooled = summed / float(kk[0] * kk[1])
    return jnp.power(pooled, 1.0 / p_val)


if __name__ == "__main__":
    key = jax.random.PRNGKey(0)
    x = jax.random.normal(key, (2, 4, 16, 16), dtype=jnp.float32)

    # Parameter init matches nn.Parameter(torch.ones(1) * 3)
    p_param = jnp.ones((1,), dtype=jnp.float32) * 3.0

    out = gem_forward(x, p_param)
    out = jax.block_until_ready(out)

    ref = _gem_reference(x, p_param)
    assert out.shape == (2, 4, 8, 8), out.shape
    assert jnp.allclose(out, ref, rtol=1e-4, atol=1e-5), (
        float(jnp.max(jnp.abs(out - ref))))

    print("KERNEL_OK")
</pallas_src>

<mosaic_0001>
module attributes {stable_mosaic.version = 11 : i64} {
  func.func @_gem_kernel(%arg0: i32, %arg1: memref<1xf32, #tpu.memory_space<smem>>, %arg2: memref<8x256xf32, #tpu.memory_space<vmem>>, %arg3: memref<256x64xf32, #tpu.memory_space<vmem>>, %arg4: memref<8x64xf32, #tpu.memory_space<vmem>>) attributes {dimension_semantics = [#tpu.dimension_semantics<parallel>], iteration_bounds = array<i64: 1>, scalar_prefetch = 0 : i64, scratch_operands = 0 : i64, tpu.core_type = #tpu.core_type<tc>, window_params = [{transform_indices = @transform_0, window_bounds = array<i64: 1>}, {transform_indices = @transform_1, window_bounds = array<i64: 8, 256>}, {pipeline_mode = #tpu.pipeline_mode<synchronous>, transform_indices = @transform_2, window_bounds = array<i64: 256, 64>}, {transform_indices = @transform_3, window_bounds = array<i64: 8, 64>}]} {
    %c0 = arith.constant 0 : index
    %0 = memref.load %arg1[%c0] : memref<1xf32, #tpu.memory_space<smem>>
    %cst = arith.constant 1.000000e+00 : f32
    %1 = arith.divf %cst, %0 : f32
    %c0_0 = arith.constant 0 : index
    %c0_1 = arith.constant 0 : index
    %2 = vector.load %arg2[%c0_0, %c0_1] : memref<8x256xf32, #tpu.memory_space<vmem>>, vector<8x256xf32>
    %cst_2 = arith.constant 9.99999997E-7 : f32
    %3 = vector.broadcast %cst_2 : f32 to vector<8x256xf32>
    %4 = arith.maximumf %2, %3 : vector<8x256xf32>
    %5 = math.log %4 : vector<8x256xf32>
    %6 = vector.broadcast %0 : f32 to vector<8x256xf32>
    %7 = arith.mulf %6, %5 : vector<8x256xf32>
    %8 = math.exp %7 : vector<8x256xf32>
    %c0_3 = arith.constant 0 : index
    %c0_4 = arith.constant 0 : index
    %9 = vector.load %arg3[%c0_3, %c0_4] : memref<256x64xf32, #tpu.memory_space<vmem>>, vector<256x64xf32>
    %cst_5 = arith.constant dense<0.000000e+00> : vector<8x64xf32>
    %10 = tpu.matmul %8, %9, %cst_5 {dimension_numbers = #tpu.dot_dimension_numbers<[1], [0], [0], [1], [0, 0, 1, 1], [], []>} : vector<8x256xf32>, vector<256x64xf32>, vector<8x64xf32> -> vector<8x64xf32>
    %cst_6 = arith.constant 0.111111112 : f32
    %11 = vector.broadcast %cst_6 : f32 to vector<8x64xf32>
    %12 = arith.mulf %10, %11 : vector<8x64xf32>
    %13 = math.log %12 : vector<8x64xf32>
    %14 = vector.broadcast %1 : f32 to vector<8x64xf32>
    %15 = arith.mulf %14, %13 : vector<8x64xf32>
    %16 = math.exp %15 : vector<8x64xf32>
    %c0_7 = arith.constant 0 : index
    %c0_8 = arith.constant 0 : index
    %17 = vector.load %arg4[%c0_7, %c0_8] : memref<8x64xf32, #tpu.memory_space<vmem>>, vector<8x64xf32>
    tpu.vector_store %arg4[%c0_7, %c0_8], %16 {strides = array<i32>} : memref<8x64xf32, #tpu.memory_space<vmem>>, vector<8x64xf32>,
    return
  }
  func.func @transform_0(%arg0: i32) -> i32 {
    %c0_i32 = arith.constant 0 : i32
    %c0_i32_0 = arith.constant 0 : i32
    return %c0_i32 : i32
  }
  func.func @transform_1(%arg0: i32) -> (i32, i32) {
    %c0_i32 = arith.constant 0 : i32
    %c0_i32_0 = arith.constant 0 : i32
    return %arg0, %c0_i32 : i32, i32
  }
  func.func @transform_2(%arg0: i32) -> (i32, i32) {
    %c0_i32 = arith.constant 0 : i32
    %c0_i32_0 = arith.constant 0 : i32
    %c0_i32_1 = arith.constant 0 : i32
    return %c0_i32, %c0_i32_0 : i32, i32
  }
  func.func @transform_3(%arg0: i32) -> (i32, i32) {
    %c0_i32 = arith.constant 0 : i32
    %c0_i32_0 = arith.constant 0 : i32
    return %arg0, %c0_i32 : i32, i32
  }
}

</mosaic_0001>

<bundles_post_ra>
// kernel: tpu_custom_call.1
= control target key start
LH: loop header
LB: loop body
LE: loop exit
PB: predicated region body
PF: predicated region fallthrough
CT: control target
= control target key end

     0   :  { %s411_s0 = inlined_call_operand.<no memory space> [shape: f32[1], index: 0, kind: input, shape index: {}]   ;;  %s412_s1 = inlined_call_operand.vmem [shape: f32[8,256], index: 1, kind: input, shape index: {}]   ;;  %s413_s2 = inlined_call_operand.vmem [shape: f32[256,64], index: 2, kind: input, shape index: {}]   ;;  %s414_s3 = inlined_call_operand.hbm [shape: f32[8,64], index: 3, kind: output, shape index: {}]  }
   0x1   :  { %v51_v0 = vld [vmem:[%s413_s2 + $0x80] sm:$0xff]  ;;  %v52_v1 = vld [vmem:[%s413_s2 + $0x88] sm:$0xff]  ;;  %v301_v3 = vstv %s411_s0  ;;  %v53_v6 = vld [vmem:[%s413_s2 + $0x90] sm:$0xff] }
   0x2   :  { %v35_v2 = vld [vmem:[%s413_s2] sm:$0xff]  ;;  %v195_v4 = vpack.c.bf16 %v52_v1, %v51_v0  ;;  %v36_v5 = vld [vmem:[%s413_s2 + $0x8] sm:$0xff]  ;;  %v54_v7 = vld [vmem:[%s413_s2 + $0x98] sm:$0xff]  ;;  %230 = vrcp.f32 %v301_v3 }
   0x3   :  { %v197_v8 = vpack.c.bf16 %v36_v5, %v35_v2  ;;  %v199_v9 = vpack.c.bf16 %v54_v7, %v53_v6  ;;  %v37_v10 = vld [vmem:[%s413_s2 + $0x10] sm:$0xff]  ;;  %v38_v11 = vld [vmem:[%s413_s2 + $0x18] sm:$0xff]  ;;  %v55_v12 = vld [vmem:[%s413_s2 + $0xa0] sm:$0xff] }
   0x4   :  { %196 = vmatprep.subr.bf16.mxu0 %v195_v4  ;;  %v56_v13 = vld [vmem:[%s413_s2 + $0xa8] sm:$0xff]  ;;  %v201_v14 = vpack.c.bf16 %v38_v11, %v37_v10  ;;  %v39_v16 = vld [vmem:[%s413_s2 + $0x20] sm:$0xff]  ;;  %v57_v18 = vld [vmem:[%s413_s2 + $0xb0] sm:$0xff] }
   0x5   :  { %198 = vmatpush3.bf16.msra.mxu0 %v197_v8  ;;  %v203_v15 = vpack.c.bf16 %v56_v13, %v55_v12  ;;  %v40_v17 = vld [vmem:[%s413_s2 + $0x28] sm:$0xff]  ;;  %v58_v19 = vld [vmem:[%s413_s2 + $0xb8] sm:$0xff]  ;;  %v41_v22 = vld [vmem:[%s413_s2 + $0x30] sm:$0xff] }
   0x6   :  { %200 = vmatprep.subr.bf16.mxu0 %v199_v9  ;;  %v205_v20 = vpack.c.bf16 %v40_v17, %v39_v16  ;;  %v207_v21 = vpack.c.bf16 %v58_v19, %v57_v18  ;;  %v42_v23 = vld [vmem:[%s413_s2 + $0x38] sm:$0xff]  ;;  %v59_v24 = vld [vmem:[%s413_s2 + $0xc0] sm:$0xff]  ;;  %v60_v25 = vld [vmem:[%s413_s2 + $0xc8] sm:$0xff] }
   0x7   :  { %v20_v26 = vld [vmem:[%s412_s1] sm:$0xff]  ;;  %v21_v28 = vld [vmem:[%s412_s1 + $0x8] sm:$0xff] }
   0x8   :  { %v22_v29 = vmax.f32 %v20_v26, 1e-06 }
   0x9   :  { %202 = vmatpush3.bf16.msra.mxu0 %v201_v14 }
   0xa   :  { %204 = vmatprep.subr.bf16.mxu0 %v203_v15 }
   0xc   :  { %v231_v27 = vpop.eup %230 }
   0xd   :  { %9 = vsyncpa [#allocation4], 0  ;;  %206 = vmatpush3.bf16.msra.mxu0 %v205_v20  ;;  %v209_v30 = vpack.c.bf16 %v42_v23, %v41_v22  ;;  %v23_v31 = vmax.f32 %v21_v28, 1e-06  ;;  %227 = vpush %v231_v27  ;;  %v211_v32 = vpack.c.bf16 %v60_v25, %v59_v24  ;;  %v43_v33 = vld [vmem:[%s413_s2 + $0x40] sm:$0xff]  ;;  %v44_v34 = vld [vmem:[%s413_s2 + $0x48] sm:$0xff]  ;;  %232 = vlog2.f32 %v22_v29 }
   0xe   :  { %208 = vmatprep.subr.bf16.mxu0 %v207_v21  ;;  %v61_v35 = vld [vmem:[%s413_s2 + $0xd0] sm:$0xff]  ;;  %v62_v36 = vld [vmem:[%s413_s2 + $0xd8] sm:$0xff]  ;;  %v213_v37 = vpack.c.bf16 %v44_v34, %v43_v33  ;;  %v63_v41 = vld [vmem:[%s413_s2 + $0xe0] sm:$0xff]  ;;  %s268_s25 = smov [#allocation3]   ;;  %vm144_vm0 = vcmask 523264  }
   0xf   :  { %234 = vlog2.f32 %v23_v31  ;;  %v215_v38 = vpack.c.bf16 %v62_v36, %v61_v35  ;;  %v45_v39 = vld [vmem:[%s413_s2 + $0x50] sm:$0xff]  ;;  %v46_v40 = vld [vmem:[%s413_s2 + $0x58] sm:$0xff]  ;;  %v64_v42 = vld [vmem:[%s413_s2 + $0xe8] sm:$0xff]  ;;  %s152_s26 = sshll.u32 %s268_s25, 4  ;;  %s153_s26 = int_to_ptr.vmem [resolvable:$true] %s152_s26 }
  0x10   :  { %v217_v43 = vpack.c.bf16 %v46_v40, %v45_v39  ;;  %v219_v44 = vpack.c.bf16 %v64_v42, %v63_v41  ;;  %v47_v45 = vld [vmem:[%s413_s2 + $0x60] sm:$0xff]  ;;  %v48_v46 = vld [vmem:[%s413_s2 + $0x68] sm:$0xff]  ;;  %v65_v47 = vld [vmem:[%s413_s2 + $0xf0] sm:$0xff]  ;;  %s244_s0 = scalar_lea.vmem %s153_s26, 128  ;;  %p249_p1 = scmp.lt.s32.totalorder %s153_s26, %s153_s26 }
  0x11   :  { %210 = vmatpush3.bf16.msra.mxu0 %v209_v30  ;;  %v66_v48 = vld [vmem:[%s413_s2 + $0xf8] sm:$0xff]  ;;  %v221_v51 = vpack.c.bf16 %v48_v46, %v47_v45  ;;  %v49_v54 = vld [vmem:[%s413_s2 + $0x70] sm:$0xff]  ;;  %p245_p0 = scmp.ne.s32.totalorder %s153_s26, %s244_s0  ;;  %p250_p2 = scmp.lt.s32.totalorder %s244_s0, %s244_s0 }
  0x12   :  { %212 = vmatprep.subr.bf16.mxu0 %v211_v32  ;;  %v223_v53 = vpack.c.bf16 %v66_v48, %v65_v47  ;;  %v50_v55 = vld [vmem:[%s413_s2 + $0x78] sm:$0xff] }
  0x13   :  { %v225_v59 = vpack.c.bf16 %v50_v55, %v49_v54  ;;  %p251_p3 = por %p250_p2, %p249_p1 }
  0x15   :  { %214 = vmatpush3.bf16.msra.mxu0 %v213_v37  ;;  %p252_p4 = pnand %p251_p3, %p245_p0 }
  0x16   :  { %216 = vmatprep.subr.bf16.mxu0 %v215_v38 }
  0x17   :  { %v233_v49 = vpop.eup %232 }
  0x18   :  { %v25_v52 = vmul.f32 0.6931472, %v233_v49 }
  0x19   :  { %v235_v50 = vpop.eup %234  ;;  %218 = vmatpush3.bf16.msra.mxu0 %v217_v43 }
  0x1a   :  { %220 = vmatprep.subr.bf16.mxu0 %v219_v44  ;;  %v27_v56 = vmul.f32 0.6931472, %v235_v50  ;;  %v29_v57 = vmul.f32 %v25_v52, %v301_v3 }
  0x1c   :  { %v30_v58 = vmul.f32 %v27_v56, %v301_v3  ;;  %v31_v60 = vmul.f32 1.442695, %v29_v57 }
  0x1d   :  { %222 = vmatpush3.bf16.msra.mxu0 %v221_v51 }
  0x1e   :  { %224 = vmatprep.subr.bf16.mxu0 %v223_v53  ;;  %v33_v61 = vmul.f32 1.442695, %v30_v58  ;;  %236 = vpow2.f32 %v31_v60 }
  0x20   :  { %238 = vpow2.f32 %v33_v61 }
  0x21   :  { %226 = vmatpush3.bf16.msra.mxu0 %v225_v59 }
  0x28   :  { %v237_v62 = vpop.eup %236 }
  0x2a   :  { %v239_v63 = vpop.eup %238 }
  0x2b   :  { %131 = vmatprep.mubr.f32.mxu0 %v239_v63 }
  0x2c   :  { %132 = vmatmul.mubr.f32.vlgmr.msra.gmra.mrb[0].mxu0 %v237_v62 }
  0x3e   :  { %s228_s2 = spop %227 }
  0x3f   :  { %v140_v3 = vstv %s228_s2 }
  0xff   :  { %v192_v0 = vpop.f32.mrb[0].mxu0 }
 0x100   :  { %v193_v1 = vpop.f32.mrb[1].mxu0 }
 0x101   :  { %v194_v2 = vadd.f32 %v193_v1, %v192_v0 }
 0x103   :  { %v137_v4 = vmul.f32 0.11111111, %v194_v2 }
 0x105   :  { %240 = vlog2.f32 %v137_v4 }
 0x10f   :  { %v241_v5 = vpop.eup %240 }
 0x110   :  { %v139_v6 = vmul.f32 0.6931472, %v241_v5 }
 0x112   :  { %v141_v7 = vmul.f32 %v140_v3, %v139_v6 }
 0x114   :  { %v142_v8 = vmul.f32 1.442695, %v141_v7 }
 0x116   :  { %242 = vpow2.f32 %v142_v8 }
 0x120   :  { %v243_v9 = vpop.eup %242 }
 0x121   :  { %145 = vst.msk [vmem:[#allocation3] sm:$0xff] %vm144_vm0, %v243_v9 }
 0x122   :  { %255 = shalt.err (!%p252_p4)
}
 0x123   :  { %s256_s29 = scalar_lea.hbm %s414_s3, 128 }
 0x124   :  { %p257_p5 = scmp.ne.s32.totalorder %s414_s3, %s256_s29  ;;  %p260_p6 = scmp.lt.u32.totalorder %s256_s29, %s414_s3 }
 0x126   :  { %p262_p7 = pnand %p260_p6, %p257_p5 }
 0x128   :  { %265 = shalt.err (!%p262_p7)
}
 0x129   :  { %155 = dma.vmem_to_hbm [thread:$0]  %s153_s26, 128, %s414_s3, [#allocation4]  }
 0x12a   :  { %266 = dma.done.wait [#allocation4], 128  }
 0x12b   :  { %267 = vsyncadd [#allocation4], 4294967168 }
 0x12c   :  { %159 = vsyncpa [#allocation4], 1 }

</bundles_post_ra>
